<compile_context>
chip_gen: v5e
topology: v5e:2x2
jax: 0.10.0
libtpu: 0.0.40
codegen_flags: <defaults>
</compile_context>

<pallas_src>
import functools

import jax
import jax.numpy as jnp
from jax.experimental import pallas as pl
from jax.experimental.pallas import tpu as pltpu

LANE = 128


def _round_up(x, m):
    return (x + m - 1) // m * m


def _sublane_mult(dtype):
    # (8,128) vreg tile for 32-bit dtypes, (16,128) for 16-bit, (32,128) for 8-bit.
    return max(8, 32 // jnp.dtype(dtype).itemsize)


@functools.lru_cache(maxsize=None)
def _auto_tiling():
    """Returns (block_rows, n_splits, vmem_limit_bytes) tuned per generation."""
    vmem_bytes = 128 << 20
    try:
        vmem_bytes = int(pltpu.get_tpu_info().vmem_capacity_bytes)
    except Exception:
        pass
    if vmem_bytes <= (64 << 20):
        # v7x-class: 64 MiB VMEM per TensorCore, 2 TensorCores, ~3.2 TB/s HBM.
        # 8192-row f32 blocks = 4 MiB/input, 16 MiB double-buffered for both
        # inputs -> per-step overhead ~10% while staying well under 32 MiB.
        return 8192, 2, 32 << 20
    # v5e / v6e-class: 128 MiB VMEM, single TensorCore. 4096-row blocks
    # (8 MiB double-buffered) reach ~90%+ of the HBM roofline.
    return 4096, 1, 32 << 20


def _wce_partial_kernel(p_ref, y_ref, o_ref, *, valid_rows, block_rows, bps,
                        lane, need_weighted, may_need_mask):
    """Accumulate (8,128)-shaped partials of [bce, y*bce, y] into the output
    block that stays resident in VMEM across the reduction axis."""
    s = pl.program_id(0)   # split axis ("parallel": one per TensorCore on v7x)
    i = pl.program_id(1)   # block axis ("arbitrary": sequential reduction)

    @pl.when(i == 0)
    def _():
        o_ref[...] = jnp.zeros_like(o_ref)

    b = s * bps + i
    g = block_rows // 8

    p_f = p_ref[...].astype(jnp.float32)
    y_f = y_ref[...].astype(jnp.float32)

    def accumulate(p, y):
        # F.binary_cross_entropy: -(y*log(p) + (1-y)*log(1-p)), logs clamped
        # at -100, rewritten as -(y*(log_p - log_1mp) + log_1mp).
        # TODO(synk): jnp.log1p(-p) is slightly more accurate as p->1; kept
        # jnp.log(1-p) (clamped) to match the proven Mosaic lowering path.
        log_p = jnp.maximum(jnp.log(p), -100.0)
        log_1mp = jnp.maximum(jnp.log(1.0 - p), -100.0)
        bce = -(y * (log_p - log_1mp) + log_1mp)
        # VPU-only partial reduce (block_rows, lane) -> (8, lane); the final
        # cross-lane XLU reduction is done once, outside the kernel.
        o_ref[0, 0] += bce.reshape(g, 8, lane).sum(axis=0)
        if need_weighted:
            o_ref[0, 1] += (y * bce).reshape(g, 8, lane).sum(axis=0)
            o_ref[0, 2] += y.reshape(g, 8, lane).sum(axis=0)

    if may_need_mask:
        # Only the last (partial) real block and phantom blocks introduced by
        # the core split need masking; interior blocks take the unmasked fast
        # path so v7x stays at the HBM roofline instead of going VALU-bound.
        needs_mask = (b + 1) * block_rows > valid_rows

        @pl.when(jnp.logical_not(needs_mask))
        def _():
            accumulate(p_f, y_f)

        @pl.when(needs_mask)
        def _():
            row_idx = b * block_rows + jax.lax.broadcasted_iota(
                jnp.int32, (block_rows, lane), 0)
            valid = row_idx < valid_rows
            zero = jnp.zeros((), jnp.float32)
            # Masking the two inputs suffices: BCE(0, 0) == 0 exactly, so
            # masked rows contribute 0 to every accumulator.
            accumulate(jnp.where(valid, p_f, zero), jnp.where(valid, y_f, zero))
    else:
        accumulate(p_f, y_f)


def _partial_sums(preds, labels, block_rows, n_splits, vmem_limit_bytes,
                  need_weighted):
    """Returns (sum(BCE), sum(y*BCE), sum(y)) as f32 scalars (the last two are
    None when need_weighted=False).

    Inputs stream at their native dtype: passing bf16 preds/labels (or uint8
    labels) halves/quarters the HBM traffic of this HBM-bound kernel; the f32
    upcast happens on the VPU inside the kernel.
    """
    assert preds.shape == labels.shape
    n = preds.size
    sub = max(_sublane_mult(preds.dtype), _sublane_mult(labels.dtype))

    rows = pl.cdiv(n, LANE)
    # Cap the block so each split sees >= ~4 blocks (keeps the double-buffer
    # overlapping DMA with compute), never below one sublane group.
    brows = min(block_rows, _round_up(pl.cdiv(rows, max(1, n_splits) * 4), sub))
    brows = _round_up(max(min(brows, rows), 1), sub)

    rows_alloc = max(rows, brows)
    nblocks = pl.cdiv(rows_alloc, brows)
    if nblocks < n_splits:
        n_splits = 1                      # too small to feed two TensorCores
    bps = pl.cdiv(nblocks, n_splits)

    pad = rows_alloc * LANE - n
    p_flat = preds.reshape(-1)
    y_flat = labels.reshape(-1)
    if pad:
        # Ragged sizes pay one pad copy per input (pad values are 0, so they
        # contribute exactly 0); lane-aligned NCHW shapes skip it entirely.
        p_flat = jnp.pad(p_flat, (0, pad))
        y_flat = jnp.pad(y_flat, (0, pad))
    p2 = p_flat.reshape(rows_alloc, LANE)
    y2 = y_flat.reshape(rows_alloc, LANE)

    # Masking is only emitted when a partial last block or phantom split
    # blocks can actually occur.
    may_need_mask = (rows_alloc % brows != 0) or (n_splits * bps != nblocks)
    num_out = 3 if need_weighted else 1

    kernel = functools.partial(
        _wce_partial_kernel,
        valid_rows=rows_alloc, block_rows=brows, bps=bps, lane=LANE,
        need_weighted=need_weighted, may_need_mask=may_need_mask)

    # Clamp the block index so phantom blocks of the split axis stay in
    # bounds; the in-kernel row mask (from the *unclamped* position) zeroes
    # their contribution.
    in_map = lambda s, i: (jnp.minimum(s * bps + i, nblocks - 1), 0)

    itemsize = (jnp.dtype(preds.dtype).itemsize
                + jnp.dtype(labels.dtype).itemsize)
    acc = pl.pallas_call(
        kernel,
        out_shape=jax.ShapeDtypeStruct((n_splits, num_out, 8, LANE),
                                       jnp.float32),
        grid=(n_splits, bps),
        in_specs=[
            pl.BlockSpec((brows, LANE), in_map),
            pl.BlockSpec((brows, LANE), in_map),
        ],
        out_specs=pl.BlockSpec((1, num_out, 8, LANE),
                               lambda s, i: (s, 0, 0, 0)),
        compiler_params=pltpu.CompilerParams(
            dimension_semantics=("parallel", "arbitrary"),
            vmem_limit_bytes=vmem_limit_bytes),
        cost_estimate=pl.CostEstimate(
            flops=(10 if need_weighted else 6) * rows_alloc * LANE,
            transcendentals=2 * rows_alloc * LANE,
            bytes_accessed=rows_alloc * LANE * itemsize
            + n_splits * num_out * 8 * LANE * 4),
    )(p2, y2)

    sums = acc.sum(axis=(0, 2, 3))   # (num_out,)
    if need_weighted:
        return sums[0], sums[1], sums[2]
    return sums[0], None, None


@functools.partial(
    jax.jit, static_argnames=("block_rows", "n_splits", "vmem_limit_bytes"))
def _weighted_bce_loss_impl(preds, labels, block_rows, n_splits,
                            vmem_limit_bytes):
    s0, s1, sl = _partial_sums(preds, labels, block_rows, n_splits,
                               vmem_limit_bytes, need_weighted=True)
    mean_y = sl / jnp.float32(preds.size)
    # loss = sum((m + (1-2m)*y) * bce) = m*sum(bce) + (1-2m)*sum(y*bce)
    return mean_y * s0 + (1.0 - 2.0 * mean_y) * s1


@functools.partial(
    jax.jit, static_argnames=("block_rows", "n_splits", "vmem_limit_bytes"))
def _bce_loss_impl(preds, labels, block_rows, n_splits, vmem_limit_bytes):
    s0, _, _ = _partial_sums(preds, labels, block_rows, n_splits,
                             vmem_limit_bytes, need_weighted=False)
    return s0


def weighted_bce_loss(preds, labels, block_rows=None):
    auto_brows, n_splits, vmem = _auto_tiling()
    brows = auto_brows if block_rows is None else block_rows
    return _weighted_bce_loss_impl(preds, labels, block_rows=brows,
                                   n_splits=n_splits, vmem_limit_bytes=vmem)


def bce_loss(preds, labels, block_rows=None):
    auto_brows, n_splits, vmem = _auto_tiling()
    brows = auto_brows if block_rows is None else block_rows
    return _bce_loss_impl(preds, labels, block_rows=brows,
                          n_splits=n_splits, vmem_limit_bytes=vmem)


class Loss:
    """JAX/Pallas port of the PyTorch Loss module (default: 'WCE')."""

    def __init__(self, loss_function="WCE"):
        self.name = loss_function

    def __call__(self, preds, labels):
        if self.name == "WCE":
            return weighted_bce_loss(preds, labels)
        elif self.name == "BCE":
            return bce_loss(preds, labels)
        else:
            # TODO(synk): Dice/SSIM/IOU/Tversky/FTL++/HFL/AW/RCF/Grad not lowered.
            raise NameError(f"loss '{self.name}' not implemented in Pallas port")


# ---------------- pure-JAX references for self-check ----------------

def _reference_bce(preds, labels):
    log_p = jnp.maximum(jnp.log(preds), -100.0)
    log_1mp = jnp.maximum(jnp.log(1.0 - preds), -100.0)
    return jnp.sum(-(labels * log_p + (1.0 - labels) * log_1mp))


def _reference_wce(preds, labels):
    beta = 1.0 - jnp.mean(labels)
    weights = 1.0 - beta + (2.0 * beta - 1.0) * labels
    log_p = jnp.maximum(jnp.log(preds), -100.0)
    log_1mp = jnp.maximum(jnp.log(1.0 - preds), -100.0)
    bce = -(labels * log_p + (1.0 - labels) * log_1mp)
    return jnp.sum(weights * bce)


if __name__ == "__main__":
    key = jax.random.PRNGKey(0)
    k1, k2, k3, k4 = jax.random.split(key, 4)

    # NCHW binary-segmentation-style inputs: preds in (0,1), labels in {0,1}.
    shape = (2, 1, 16, 16)
    preds = jax.nn.sigmoid(jax.random.normal(k1, shape, dtype=jnp.float32))
    labels = (jax.random.uniform(k2, shape) > 0.5).astype(jnp.float32)

    out_wce = Loss("WCE")(preds, labels)
    out_bce = Loss("BCE")(preds, labels)
    jax.block_until_ready((out_wce, out_bce))

    ref_wce = _reference_wce(preds, labels)
    ref_bce = _reference_bce(preds, labels)
    assert jnp.allclose(out_wce, ref_wce, rtol=1e-4, atol=1e-3), (out_wce, ref_wce)
    assert jnp.allclose(out_bce, ref_bce, rtol=1e-4, atol=1e-3), (out_bce, ref_bce)

    # Exercise the multi-block, forced 2-split (phantom-block clamp) and
    # ragged-tail masking paths with a deliberately tiny block size so they
    # are covered regardless of which chip generation runs this script.
    shape2 = (2, 3, 37, 53)
    p2 = jax.nn.sigmoid(jax.random.normal(k3, shape2, dtype=jnp.float32))
    y2 = (jax.random.uniform(k4, shape2) > 0.7).astype(jnp.float32)
    out2 = _weighted_bce_loss_impl(p2, y2, block_rows=8, n_splits=2,
                                   vmem_limit_bytes=32 << 20)
    out3 = _bce_loss_impl(p2, y2, block_rows=8, n_splits=2,
                          vmem_limit_bytes=32 << 20)
    jax.block_until_ready((out2, out3))
    ref2 = _reference_wce(p2, y2)
    ref3 = _reference_bce(p2, y2)
    assert jnp.allclose(out2, ref2, rtol=1e-4, atol=1e-2), (out2, ref2)
    assert jnp.allclose(out3, ref3, rtol=1e-4, atol=1e-2), (out3, ref3)

    print("KERNEL_OK")
</pallas_src>

<mosaic_0001>
module attributes {stable_mosaic.version = 11 : i64} {
  func.func @_wce_partial_kernel(%arg0: i32, %arg1: i32, %arg2: memref<8x128xf32, #tpu.memory_space<vmem>>, %arg3: memref<8x128xf32, #tpu.memory_space<vmem>>, %arg4: memref<1x3x8x128xf32, #tpu.memory_space<vmem>>) attributes {dimension_semantics = [#tpu.dimension_semantics<parallel>, #tpu.dimension_semantics<arbitrary>], iteration_bounds = array<i64: 1, 1>, scalar_prefetch = 0 : i64, scratch_operands = 0 : i64, tpu.core_type = #tpu.core_type<tc>, window_params = [{transform_indices = @transform_0, window_bounds = array<i64: 8, 128>}, {transform_indices = @transform_1, window_bounds = array<i64: 8, 128>}, {transform_indices = @transform_2, window_bounds = array<i64: 1, 3, 8, 128>}]} {
    %c0_i32 = arith.constant 0 : i32
    %0 = arith.cmpi eq, %arg1, %c0_i32 : i32
    %1 = arith.extui %0 : i1 to i32
    %c0_i32_0 = arith.constant 0 : i32
    %2 = arith.cmpi ne, %1, %c0_i32_0 : i32
    scf.if %2 {
      %cst_32 = arith.constant 0.000000e+00 : f32
      %43 = vector.broadcast %cst_32 : f32 to vector<1x3x8x128xf32>
      %c0_33 = arith.constant 0 : index
      %c0_34 = arith.constant 0 : index
      %c0_35 = arith.constant 0 : index
      %c0_36 = arith.constant 0 : index
      %44 = vector.load %arg4[%c0_33, %c0_34, %c0_35, %c0_36] : memref<1x3x8x128xf32, #tpu.memory_space<vmem>>, vector<1x3x8x128xf32>
      tpu.vector_store %arg4[%c0_33, %c0_34, %c0_35, %c0_36], %43 {strides = array<i32>} : memref<1x3x8x128xf32, #tpu.memory_space<vmem>>, vector<1x3x8x128xf32>,
    } else {
    }
    %c0 = arith.constant 0 : index
    %c0_1 = arith.constant 0 : index
    %3 = vector.load %arg2[%c0, %c0_1] : memref<8x128xf32, #tpu.memory_space<vmem>>, vector<8x128xf32>
    %c0_2 = arith.constant 0 : index
    %c0_3 = arith.constant 0 : index
    %4 = vector.load %arg3[%c0_2, %c0_3] : memref<8x128xf32, #tpu.memory_space<vmem>>, vector<8x128xf32>
    %5 = math.log %3 : vector<8x128xf32>
    %cst = arith.constant -1.000000e+02 : f32
    %6 = vector.broadcast %cst : f32 to vector<8x128xf32>
    %7 = arith.maximumf %5, %6 : vector<8x128xf32>
    %cst_4 = arith.constant 1.000000e+00 : f32
    %8 = vector.broadcast %cst_4 : f32 to vector<8x128xf32>
    %9 = arith.subf %8, %3 : vector<8x128xf32>
    %10 = math.log %9 : vector<8x128xf32>
    %cst_5 = arith.constant -1.000000e+02 : f32
    %11 = vector.broadcast %cst_5 : f32 to vector<8x128xf32>
    %12 = arith.maximumf %10, %11 : vector<8x128xf32>
    %13 = arith.subf %7, %12 : vector<8x128xf32>
    %14 = arith.mulf %4, %13 : vector<8x128xf32>
    %15 = arith.addf %14, %12 : vector<8x128xf32>
    %cst_6 = arith.constant 0.000000e+00 : f32
    %16 = vector.broadcast %cst_6 : f32 to vector<8x128xf32>
    %17 = arith.subf %16, %15 : vector<8x128xf32>
    %c0_7 = arith.constant 0 : index
    %c0_8 = arith.constant 0 : index
    %c0_9 = arith.constant 0 : index
    %c0_10 = arith.constant 0 : index
    %18 = vector.load %arg4[%c0_7, %c0_8, %c0_9, %c0_10] : memref<1x3x8x128xf32, #tpu.memory_space<vmem>>, vector<1x1x8x128xf32>
    %19 = vector.shape_cast %18 : vector<1x1x8x128xf32> to vector<8x128xf32>
    %20 = vector.shape_cast %17 : vector<8x128xf32> to vector<1x8x128xf32>
    %cst_11 = arith.constant dense<0.000000e+00> : vector<8x128xf32>
    %21 = vector.multi_reduction <add>, %20, %cst_11 [0] : vector<1x8x128xf32> to vector<8x128xf32>
    %22 = arith.addf %19, %21 : vector<8x128xf32>
    %c0_12 = arith.constant 0 : index
    %c0_13 = arith.constant 0 : index
    %c0_14 = arith.constant 0 : index
    %c0_15 = arith.constant 0 : index
    %23 = vector.load %arg4[%c0_12, %c0_13, %c0_14, %c0_15] : memref<1x3x8x128xf32, #tpu.memory_space<vmem>>, vector<1x1x8x128xf32>
    %24 = vector.shape_cast %23 : vector<1x1x8x128xf32> to vector<8x128xf32>
    %25 = vector.shape_cast %22 : vector<8x128xf32> to vector<1x1x8x128xf32>
    tpu.vector_store %arg4[%c0_12, %c0_13, %c0_14, %c0_15], %25 {strides = array<i32>} : memref<1x3x8x128xf32, #tpu.memory_space<vmem>>, vector<1x1x8x128xf32>,
    %c0_16 = arith.constant 0 : index
    %c1 = arith.constant 1 : index
    %c0_17 = arith.constant 0 : index
    %c0_18 = arith.constant 0 : index
    %26 = vector.load %arg4[%c0_16, %c1, %c0_17, %c0_18] : memref<1x3x8x128xf32, #tpu.memory_space<vmem>>, vector<1x1x8x128xf32>
    %27 = vector.shape_cast %26 : vector<1x1x8x128xf32> to vector<8x128xf32>
    %28 = arith.mulf %4, %17 : vector<8x128xf32>
    %29 = vector.shape_cast %28 : vector<8x128xf32> to vector<1x8x128xf32>
    %cst_19 = arith.constant dense<0.000000e+00> : vector<8x128xf32>
    %30 = vector.multi_reduction <add>, %29, %cst_19 [0] : vector<1x8x128xf32> to vector<8x128xf32>
    %31 = arith.addf %27, %30 : vector<8x128xf32>
    %c0_20 = arith.constant 0 : index
    %c1_21 = arith.constant 1 : index
    %c0_22 = arith.constant 0 : index
    %c0_23 = arith.constant 0 : index
    %32 = vector.load %arg4[%c0_20, %c1_21, %c0_22, %c0_23] : memref<1x3x8x128xf32, #tpu.memory_space<vmem>>, vector<1x1x8x128xf32>
    %33 = vector.shape_cast %32 : vector<1x1x8x128xf32> to vector<8x128xf32>
    %34 = vector.shape_cast %31 : vector<8x128xf32> to vector<1x1x8x128xf32>
    tpu.vector_store %arg4[%c0_20, %c1_21, %c0_22, %c0_23], %34 {strides = array<i32>} : memref<1x3x8x128xf32, #tpu.memory_space<vmem>>, vector<1x1x8x128xf32>,
    %c0_24 = arith.constant 0 : index
    %c2 = arith.constant 2 : index
    %c0_25 = arith.constant 0 : index
    %c0_26 = arith.constant 0 : index
    %35 = vector.load %arg4[%c0_24, %c2, %c0_25, %c0_26] : memref<1x3x8x128xf32, #tpu.memory_space<vmem>>, vector<1x1x8x128xf32>
    %36 = vector.shape_cast %35 : vector<1x1x8x128xf32> to vector<8x128xf32>
    %37 = vector.shape_cast %4 : vector<8x128xf32> to vector<1x8x128xf32>
    %cst_27 = arith.constant dense<0.000000e+00> : vector<8x128xf32>
    %38 = vector.multi_reduction <add>, %37, %cst_27 [0] : vector<1x8x128xf32> to vector<8x128xf32>
    %39 = arith.addf %36, %38 : vector<8x128xf32>
    %c0_28 = arith.constant 0 : index
    %c2_29 = arith.constant 2 : index
    %c0_30 = arith.constant 0 : index
    %c0_31 = arith.constant 0 : index
    %40 = vector.load %arg4[%c0_28, %c2_29, %c0_30, %c0_31] : memref<1x3x8x128xf32, #tpu.memory_space<vmem>>, vector<1x1x8x128xf32>
    %41 = vector.shape_cast %40 : vector<1x1x8x128xf32> to vector<8x128xf32>
    %42 = vector.shape_cast %39 : vector<8x128xf32> to vector<1x1x8x128xf32>
    tpu.vector_store %arg4[%c0_28, %c2_29, %c0_30, %c0_31], %42 {strides = array<i32>} : memref<1x3x8x128xf32, #tpu.memory_space<vmem>>, vector<1x1x8x128xf32>,
    return
  }
  func.func @transform_0(%arg0: i32, %arg1: i32) -> (i32, i32) {
    %c1_i32 = arith.constant 1 : i32
    %0 = arith.muli %arg0, %c1_i32 : i32
    %1 = arith.addi %0, %arg1 : i32
    %c0_i32 = arith.constant 0 : i32
    %2 = arith.minsi %1, %c0_i32 : i32
    %c0_i32_0 = arith.constant 0 : i32
    %c0_i32_1 = arith.constant 0 : i32
    return %2, %c0_i32_0 : i32, i32
  }
  func.func @transform_1(%arg0: i32, %arg1: i32) -> (i32, i32) {
    %c1_i32 = arith.constant 1 : i32
    %0 = arith.muli %arg0, %c1_i32 : i32
    %1 = arith.addi %0, %arg1 : i32
    %c0_i32 = arith.constant 0 : i32
    %2 = arith.minsi %1, %c0_i32 : i32
    %c0_i32_0 = arith.constant 0 : i32
    %c0_i32_1 = arith.constant 0 : i32
    return %2, %c0_i32_0 : i32, i32
  }
  func.func @transform_2(%arg0: i32, %arg1: i32) -> (i32, i32, i32, i32) {
    %c0_i32 = arith.constant 0 : i32
    %c0_i32_0 = arith.constant 0 : i32
    %c0_i32_1 = arith.constant 0 : i32
    %c0_i32_2 = arith.constant 0 : i32
    return %arg0, %c0_i32, %c0_i32_0, %c0_i32_1 : i32, i32, i32, i32
  }
}

</mosaic_0001>

<bundles_post_ra>
// kernel: _weighted_bce_loss_impl.1
= control target key start
LH: loop header
LB: loop body
LE: loop exit
PB: predicated region body
PF: predicated region fallthrough
CT: control target
= control target key end

     0   :  { %s155_s0 = inlined_call_operand.vmem [shape: f32[8,128], index: 0, kind: input, shape index: {}]   ;;  %s156_s1 = inlined_call_operand.vmem [shape: f32[8,128], index: 1, kind: input, shape index: {}]   ;;  %s157_s2 = inlined_call_operand.vmem [shape: f32[1,3,8,128], index: 2, kind: output, shape index: {}]  }
   0x1   :  { %v72_v0 = vld [vmem:[%s155_s0] sm:$0xff] }
   0x2   :  { %v73_v1 = vld [vmem:[%s156_s1] sm:$0xff]  ;;  %121 = vlog2.f32 %v72_v0  ;;  %v77_v2 = vsub.f32 1.0, %v72_v0 }
   0x3   :  { %119 = vst [vmem:[%s157_s2 + $0x10] sm:$0xff] %v73_v1 }
   0x4   :  { %123 = vlog2.f32 %v77_v2 }
   0x8   :  { %v122_v3 = vpop.eup %121 }
   0x9   :  { %v75_v4 = vmul.f32 0.6931472, %v122_v3 }
   0xa   :  { %v124_v5 = vpop.eup %123 }
   0xb   :  { %v76_v6 = vmax.f32 %v75_v4, -100.0  ;;  %v79_v7 = vmul.f32 0.6931472, %v124_v5 }
   0xd   :  { %v80_v8 = vmax.f32 %v79_v7, -100.0 }
   0xf   :  { %v81_v9 = vsub.f32 %v76_v6, %v80_v8 }
  0x11   :  { %v82_v10 = vmul.f32 %v81_v9, %v73_v1 }
  0x13   :  { %v83_v11 = vadd.f32 %v82_v10, %v80_v8 }
  0x15   :  { %v84_v12 = vsub.f32 0.0, %v83_v11 }
  0x17   :  { %v91_v13 = vmul.f32 %v84_v12, %v73_v1  ;;  %88 = vst [vmem:[%s157_s2] sm:$0xff] %v84_v12 }
  0x19   :  { %117 = vst [vmem:[%s157_s2 + $0x8] sm:$0xff] %v91_v13 }

</bundles_post_ra>
